<compile_context>
chip_gen: v7x
topology: tpu7x:2x2x1
jax: 0.10.0
libtpu: 0.0.40
codegen_flags: <defaults>
</compile_context>

<pallas_src>
import functools

import jax
import jax.numpy as jnp
from jax.experimental import pallas as pl
from jax.experimental.pallas import tpu as pltpu


def _round_up(x, m):
    return ((x + m - 1) // m) * m


def _vmem_budget(block_bytes):
    """Scoped-VMEM request: double-buffered blocks x2 + headroom, clamped to safe range."""
    need = 4 * block_bytes + (4 << 20)
    return int(min(max(need, 32 << 20), 96 << 20))


# ----------------------------- router kernel ------------------------------- #

def _router_kernel(x_ref, w_ref, b_ref, o_ref):
    o_ref[...] = (jnp.dot(x_ref[...], w_ref[...],
                          preferred_element_type=jnp.float32) + b_ref[...])


def router_forward(x_pad_bf16, wr, br, wn, bn, *, tn):
    """Fused router matmul; returns (logits, noise_logits), each (N_pad, E) float32."""
    N_pad, C_pad = x_pad_bf16.shape
    C, E = wr.shape
    P = max(128, _round_up(2 * E, 128))                  # lane-dense output width
    w_cat = jnp.zeros((C_pad, P), jnp.float32)
    w_cat = w_cat.at[:C, :E].set(wr).at[:C, E:2 * E].set(wn).astype(jnp.bfloat16)
    b_cat = jnp.zeros((1, P), jnp.float32)
    b_cat = b_cat.at[0, :E].set(br).at[0, E:2 * E].set(bn)

    block_bytes = tn * C_pad * 2 + C_pad * P * 2 + P * 4 + tn * P * 4
    out = pl.pallas_call(
        _router_kernel,
        out_shape=jax.ShapeDtypeStruct((N_pad, P), jnp.float32),
        grid_spec=pltpu.PrefetchScalarGridSpec(
            num_scalar_prefetch=0,
            grid=(N_pad // tn,),
            in_specs=[pl.BlockSpec((tn, C_pad), lambda t: (t, 0)),
                      pl.BlockSpec((C_pad, P), lambda t: (0, 0)),
                      pl.BlockSpec((1, P), lambda t: (0, 0))],
            out_specs=pl.BlockSpec((tn, P), lambda t: (t, 0))),
        compiler_params=pltpu.CompilerParams(
            dimension_semantics=("parallel",),
            vmem_limit_bytes=_vmem_budget(block_bytes)),
        cost_estimate=pl.CostEstimate(
            flops=int(2 * N_pad * C_pad * P), transcendentals=0,
            bytes_accessed=int(N_pad * C_pad * 2 + C_pad * P * 2 + N_pad * P * 4)),
    )(x_pad_bf16, w_cat, b_cat)
    return out[:, :E], out[:, E:2 * E]


# ----------------------------- expert kernel -------------------------------- #
# Grouped-MoE: tokens are gathered per expert into (E, cap_pad, C_pad).  Grid is
# (expert, token_tile) with the expert axis OUTERMOST so w1/w2 stay resident in
# VMEM across token tiles.  Per-expert kept-token counts are scalar-prefetched so
# all-padding capacity tiles skip both matmuls entirely.

def _expert_kernel(cnt_ref, x_ref, g_ref, w1_ref, b1_ref, w2_ref, b2_ref, out_ref, *, tc):
    e = pl.program_id(0)
    t = pl.program_id(1)
    has_work = t * tc < cnt_ref[e]

    @pl.when(has_work)
    def _():
        x = x_ref[0]                                                   # (tc, Cp) bf16
        h = jnp.dot(x, w1_ref[0], preferred_element_type=jnp.float32) + b1_ref[0]
        h = jnp.maximum(h, 0.0).astype(jnp.bfloat16)                   # ReLU, bf16 for MXU
        y = jnp.dot(h, w2_ref[0], preferred_element_type=jnp.float32) + b2_ref[0]
        out_ref[0] = y * g_ref[0]                                      # gate scale (f32)

    @pl.when(jnp.logical_not(has_work))
    def _():
        out_ref[0] = jnp.zeros_like(out_ref[0])


def moe_experts_grouped(counts, x_disp, g_disp, w1, b1, w2, b2, *, tc):
    E, CAP, Cp = x_disp.shape
    Hp = w1.shape[2]
    block_bytes = (tc * Cp * 2 + tc * 4 + Cp * Hp * 2 + Hp * 4 + Hp * Cp * 2
                   + Cp * 4 + tc * Cp * 4 + tc * Hp * 4)
    flops = 4 * E * CAP * Cp * Hp                       # two matmuls, 2 flops/MAC
    bytes_accessed = (x_disp.size * 2 + g_disp.size * 4 + E * CAP * Cp * 4
                      + (w1.size + w2.size) * 2 + (b1.size + b2.size) * 4)
    return pl.pallas_call(
        functools.partial(_expert_kernel, tc=tc),
        out_shape=jax.ShapeDtypeStruct((E, CAP, Cp), jnp.float32),
        grid_spec=pltpu.PrefetchScalarGridSpec(
            num_scalar_prefetch=1,
            grid=(E, CAP // tc),
            in_specs=[pl.BlockSpec((1, tc, Cp), lambda e, t, cnt: (e, t, 0)),
                      pl.BlockSpec((1, tc, 1), lambda e, t, cnt: (e, t, 0)),
                      pl.BlockSpec((1, Cp, Hp), lambda e, t, cnt: (e, 0, 0)),
                      pl.BlockSpec((1, 1, Hp), lambda e, t, cnt: (e, 0, 0)),
                      pl.BlockSpec((1, Hp, Cp), lambda e, t, cnt: (e, 0, 0)),
                      pl.BlockSpec((1, 1, Cp), lambda e, t, cnt: (e, 0, 0))],
            out_specs=pl.BlockSpec((1, tc, Cp), lambda e, t, cnt: (e, t, 0))),
        compiler_params=pltpu.CompilerParams(
            dimension_semantics=("parallel", "parallel"),
            vmem_limit_bytes=_vmem_budget(block_bytes)),
        cost_estimate=pl.CostEstimate(flops=int(flops), transcendentals=0,
                                      bytes_accessed=int(bytes_accessed)),
    )(counts, x_disp, g_disp, w1, b1, w2, b2)


# ------------------------------- glue (JAX) -------------------------------- #

def sparse_moe_forward(x, params, noise_key, *, top_k, capacity_factor, lb_weight,
                       return_aux=False):
    B, T, C = x.shape
    N = B * T
    E = params["wr"].shape[1]
    H = params["w1"].shape[2]
    C_pad = _round_up(C, 128)
    H_pad = _round_up(H, 128)

    x_flat = x.reshape(N, C)
    x_cpad = jnp.pad(x_flat, ((0, 0), (0, C_pad - C)))              # (N, C_pad) f32

    # --- NoisyTopkRouter (bf16 matmul; softplus / noise / top-k stay in f32) ---
    if N <= 256:
        N_pad = _round_up(N, 16)
        tn = N_pad
    else:
        N_pad = _round_up(N, 256)
        tn = 256
    x_router = jnp.pad(x_cpad, ((0, N_pad - N), (0, 0))).astype(jnp.bfloat16)
    logits, noise_logits = router_forward(
        x_router, params["wr"], params["br"], params["wn"], params["bn"], tn=tn)
    logits = logits[:N]
    noise_logits = noise_logits[:N]
    noise_std = jax.nn.softplus(noise_logits)
    noise = jax.random.normal(noise_key, logits.shape, dtype=logits.dtype) * noise_std
    noisy = logits + noise

    topk_vals, topk_idx = jax.lax.top_k(noisy, top_k)               # (N, k)
    sparse_logits = jnp.full_like(noisy, -jnp.inf)
    sparse_logits = sparse_logits.at[jnp.arange(N)[:, None], topk_idx].set(topk_vals)
    gates = jax.nn.softmax(sparse_logits, axis=-1)                  # (N, E)

    # --- load-balancing loss on the dense gates (as in the reference) ---
    expert_fraction = gates.reshape(B, T, E).mean(axis=(0, 1))
    lb_loss = jnp.mean((expert_fraction - 1.0 / E) ** 2)

    # --- capacity: keep the FIRST `expert_capacity` routed tokens per expert,
    #     computed in flat-token order BEFORE any reordering ---
    expert_capacity = max(int(N * top_k / E * capacity_factor), 1)
    routed = (topk_idx[..., None] == jnp.arange(E)).any(axis=1)     # (N, E) bool
    rank = jnp.cumsum(routed.astype(jnp.int32), axis=0)             # 1-indexed
    keep = routed & (rank <= expert_capacity)
    gate_masked = jnp.where(keep, gates, 0.0).astype(jnp.float32)
    counts = keep.sum(axis=0).astype(jnp.int32)                     # kept tokens / expert

    # --- MXU-friendly capacity padding + token-tile choice ---
    if expert_capacity > 256:
        cap_pad = _round_up(expert_capacity, 256)
        tc = 256                                                    # VMEM-safe on v7x/v5e
    else:
        cap_pad = _round_up(expert_capacity, 16)
        tc = cap_pad

    slot = jnp.where(keep, jnp.cumsum(keep.astype(jnp.int32), axis=0) - 1, cap_pad)
    e_ids = jnp.broadcast_to(jnp.arange(E)[None, :], (N, E)).reshape(-1)
    t_ids = jnp.broadcast_to(jnp.arange(N)[:, None], (N, E)).reshape(-1)
    dispatch_idx = jnp.zeros((E, cap_pad), jnp.int32).at[
        e_ids, slot.reshape(-1)].set(t_ids, mode="drop")
    dispatch_gate = jnp.zeros((E, cap_pad), jnp.float32).at[
        e_ids, slot.reshape(-1)].set(gate_masked.reshape(-1), mode="drop")

    # TODO(synk): move this gather into the expert kernel (scalar-prefetch dispatch_idx
    #             + manual row DMA from HBM) to remove the (E, cap_pad, C_pad) round trip.
    x_disp = x_cpad.astype(jnp.bfloat16)[dispatch_idx]              # (E, cap_pad, C_pad)
    g_disp = dispatch_gate[..., None]                               # (E, cap_pad, 1)

    # --- experts (hot path, Pallas; empty capacity tiles skipped via counts) ---
    w1p = jnp.pad(params["w1"], ((0, 0), (0, C_pad - C), (0, H_pad - H))).astype(jnp.bfloat16)
    b1p = jnp.pad(params["b1"], ((0, 0), (0, H_pad - H))).reshape(E, 1, H_pad)
    w2p = jnp.pad(params["w2"], ((0, 0), (0, H_pad - H), (0, C_pad - C))).astype(jnp.bfloat16)
    b2p = jnp.pad(params["b2"], ((0, 0), (0, C_pad - C))).reshape(E, 1, C_pad)
    y_disp = moe_experts_grouped(counts, x_disp, g_disp, w1p, b1p, w2p, b2p, tc=tc)

    # --- combine: top_k-way gather + weighted sum (no serialized scatter-add) ---
    keep_k = jnp.take_along_axis(keep, topk_idx, axis=1)            # (N, k)
    slot_k = jnp.take_along_axis(slot, topk_idx, axis=1)            # (N, k)
    combine_idx = jnp.where(keep_k, topk_idx * cap_pad + slot_k, E * cap_pad)
    y_flat = jnp.concatenate([y_disp.reshape(E * cap_pad, C_pad),
                              jnp.zeros((1, C_pad), jnp.float32)], axis=0)
    out_flat = y_flat[combine_idx].sum(axis=1)                      # (N, C_pad)
    out = out_flat[:, :C].reshape(B, T, C)

    if return_aux:
        return out, lb_weight * lb_loss, dict(gate_masked=gate_masked)
    return out, lb_weight * lb_loss


def init_params(key, C, E, H):
    ks = jax.random.split(key, 6)
    xavier_std = (2.0 / (C + E)) ** 0.5
    # router: xavier_normal_ weights, zero biases
    wr = jax.random.normal(ks[0], (C, E), jnp.float32) * xavier_std
    wn = jax.random.normal(ks[1], (C, E), jnp.float32) * xavier_std
    br = jnp.zeros((E,), jnp.float32)
    bn = jnp.zeros((E,), jnp.float32)
    # experts: torch.nn.Linear default init U(-1/sqrt(fan_in), 1/sqrt(fan_in))
    lim1 = 1.0 / (C ** 0.5)
    lim2 = 1.0 / (H ** 0.5)
    w1 = jax.random.uniform(ks[2], (E, C, H), jnp.float32, -lim1, lim1)
    b1 = jax.random.uniform(ks[3], (E, H), jnp.float32, -lim1, lim1)
    w2 = jax.random.uniform(ks[4], (E, H, C), jnp.float32, -lim2, lim2)
    b2 = jax.random.uniform(ks[5], (E, C), jnp.float32, -lim2, lim2)
    return dict(wr=wr, br=br, wn=wn, bn=bn, w1=w1, b1=b1, w2=w2, b2=b2)


if __name__ == "__main__":
    B, T, C = 2, 8, 32           # small shapes consistent with (B, T, n_embed)
    E, K = 8, 2                  # num_experts, top_k
    H = 4 * C
    capacity_factor = 1.0
    lb_weight = 0.01

    root = jax.random.PRNGKey(0)
    k_x, k_p, k_noise = jax.random.split(root, 3)
    x = jax.random.normal(k_x, (B, T, C), jnp.float32)
    params = init_params(k_p, C, E, H)

    fwd = jax.jit(functools.partial(sparse_moe_forward,
                                    top_k=K, capacity_factor=capacity_factor,
                                    lb_weight=lb_weight, return_aux=True))
    out, lb, aux = fwd(x, params, k_noise)
    out = jax.block_until_ready(out)
    lb = jax.block_until_ready(lb)

    # sanity: masked-dense pure-JAX reference of the expert path, using the same
    # gates / capacity mask and the same bf16-in / f32-accumulate precision.
    gm = aux["gate_masked"]
    xb = x.reshape(-1, C).astype(jnp.bfloat16)
    w1b = params["w1"].astype(jnp.bfloat16)
    w2b = params["w2"].astype(jnp.bfloat16)
    h = jnp.maximum(jnp.einsum("nc,ech->enh", xb, w1b,
                               preferred_element_type=jnp.float32)
                    + params["b1"][:, None, :], 0.0).astype(jnp.bfloat16)
    y = jnp.einsum("enh,ehc->enc", h, w2b,
                   preferred_element_type=jnp.float32) + params["b2"][:, None, :]
    ref = jnp.einsum("enc,ne->nc", y, gm)

    assert out.shape == (B, T, C) and lb.shape == ()
    assert jnp.allclose(out.reshape(-1, C), ref, atol=2e-2, rtol=2e-2), "mismatch vs reference"

    print("KERNEL_OK")
</pallas_src>

<mosaic_0001>
module attributes {stable_mosaic.version = 11 : i64} {
  func.func @_router_kernel(%arg0: i32, %arg1: memref<16x128xbf16, #tpu.memory_space<vmem>>, %arg2: memref<128x128xbf16, #tpu.memory_space<vmem>>, %arg3: memref<1x128xf32, #tpu.memory_space<vmem>>, %arg4: memref<16x128xf32, #tpu.memory_space<vmem>>) attributes {dimension_semantics = [#tpu.dimension_semantics<parallel>], iteration_bounds = array<i64: 1>, scalar_prefetch = 0 : i64, scratch_operands = 0 : i64, tpu.core_type = #tpu.core_type<tc>, window_params = [{transform_indices = @transform_0, window_bounds = array<i64: 16, 128>}, {pipeline_mode = #tpu.pipeline_mode<synchronous>, transform_indices = @transform_1, window_bounds = array<i64: 128, 128>}, {pipeline_mode = #tpu.pipeline_mode<synchronous>, transform_indices = @transform_2, window_bounds = array<i64: 1, 128>}, {transform_indices = @transform_3, window_bounds = array<i64: 16, 128>}]} {
    %c0 = arith.constant 0 : index
    %c0_0 = arith.constant 0 : index
    %0 = vector.load %arg1[%c0, %c0_0] : memref<16x128xbf16, #tpu.memory_space<vmem>>, vector<16x128xbf16>
    %c0_1 = arith.constant 0 : index
    %c0_2 = arith.constant 0 : index
    %1 = vector.load %arg2[%c0_1, %c0_2] : memref<128x128xbf16, #tpu.memory_space<vmem>>, vector<128x128xbf16>
    %cst = arith.constant dense<0.000000e+00> : vector<16x128xf32>
    %2 = tpu.matmul %0, %1, %cst {dimension_numbers = #tpu.dot_dimension_numbers<[1], [0], [0], [1], [0, 0, 1, 1], [], []>} : vector<16x128xbf16>, vector<128x128xbf16>, vector<16x128xf32> -> vector<16x128xf32>
    %c0_3 = arith.constant 0 : index
    %c0_4 = arith.constant 0 : index
    %3 = vector.load %arg3[%c0_3, %c0_4] : memref<1x128xf32, #tpu.memory_space<vmem>>, vector<1x128xf32>
    %4 = vector.broadcast %3 : vector<1x128xf32> to vector<16x128xf32>
    %5 = arith.addf %2, %4 : vector<16x128xf32>
    %c0_5 = arith.constant 0 : index
    %c0_6 = arith.constant 0 : index
    %6 = vector.load %arg4[%c0_5, %c0_6] : memref<16x128xf32, #tpu.memory_space<vmem>>, vector<16x128xf32>
    tpu.vector_store %arg4[%c0_5, %c0_6], %5 {strides = array<i32>} : memref<16x128xf32, #tpu.memory_space<vmem>>, vector<16x128xf32>,
    return
  }
  func.func @transform_0(%arg0: i32) -> (i32, i32) {
    %c0_i32 = arith.constant 0 : i32
    %c0_i32_0 = arith.constant 0 : i32
    return %arg0, %c0_i32 : i32, i32
  }
  func.func @transform_1(%arg0: i32) -> (i32, i32) {
    %c0_i32 = arith.constant 0 : i32
    %c0_i32_0 = arith.constant 0 : i32
    %c0_i32_1 = arith.constant 0 : i32
    return %c0_i32, %c0_i32_0 : i32, i32
  }
  func.func @transform_2(%arg0: i32) -> (i32, i32) {
    %c0_i32 = arith.constant 0 : i32
    %c0_i32_0 = arith.constant 0 : i32
    %c0_i32_1 = arith.constant 0 : i32
    return %c0_i32, %c0_i32_0 : i32, i32
  }
  func.func @transform_3(%arg0: i32) -> (i32, i32) {
    %c0_i32 = arith.constant 0 : i32
    %c0_i32_0 = arith.constant 0 : i32
    return %arg0, %c0_i32 : i32, i32
  }
}

module attributes {stable_mosaic.version = 11 : i64} {
  func.func @_expert_kernel(%arg0: i32, %arg1: i32, %arg2: memref<8xi32, #tpu.memory_space<smem>>, %arg3: memref<1x16x128xbf16, #tpu.memory_space<vmem>>, %arg4: memref<1x16x1xf32, #tpu.memory_space<vmem>>, %arg5: memref<1x128x128xbf16, #tpu.memory_space<vmem>>, %arg6: memref<1x1x128xf32, #tpu.memory_space<vmem>>, %arg7: memref<1x128x128xbf16, #tpu.memory_space<vmem>>, %arg8: memref<1x1x128xf32, #tpu.memory_space<vmem>>, %arg9: memref<1x16x128xf32, #tpu.memory_space<vmem>>) attributes {dimension_semantics = [#tpu.dimension_semantics<parallel>, #tpu.dimension_semantics<parallel>], iteration_bounds = array<i64: 8, 1>, scalar_prefetch = 1 : i64, scratch_operands = 0 : i64, tpu.core_type = #tpu.core_type<tc>, window_params = [{transform_indices = @transform_0, window_bounds = array<i64: 1, 16, 128>}, {transform_indices = @transform_1, window_bounds = array<i64: 1, 16, 1>}, {transform_indices = @transform_2, window_bounds = array<i64: 1, 128, 128>}, {transform_indices = @transform_3, window_bounds = array<i64: 1, 1, 128>}, {transform_indices = @transform_4, window_bounds = array<i64: 1, 128, 128>}, {transform_indices = @transform_5, window_bounds = array<i64: 1, 1, 128>}, {transform_indices = @transform_6, window_bounds = array<i64: 1, 16, 128>}]} {
    %c16_i32 = arith.constant 16 : i32
    %0 = arith.muli %arg1, %c16_i32 : i32
    %1 = arith.index_cast %arg0 : i32 to index
    %2 = memref.load %arg2[%1] : memref<8xi32, #tpu.memory_space<smem>>
    %3 = arith.cmpi slt, %0, %2 : i32
    %4 = arith.extui %3 : i1 to i32
    %c0_i32 = arith.constant 0 : i32
    %5 = arith.cmpi ne, %4, %c0_i32 : i32
    scf.if %5 {
      %c0 = arith.constant 0 : index
      %c0_1 = arith.constant 0 : index
      %c0_2 = arith.constant 0 : index
      %9 = vector.load %arg3[%c0, %c0_1, %c0_2] : memref<1x16x128xbf16, #tpu.memory_space<vmem>>, vector<1x16x128xbf16>
      %10 = vector.shape_cast %9 : vector<1x16x128xbf16> to vector<16x128xbf16>
      %c0_3 = arith.constant 0 : index
      %c0_4 = arith.constant 0 : index
      %c0_5 = arith.constant 0 : index
      %11 = vector.load %arg5[%c0_3, %c0_4, %c0_5] : memref<1x128x128xbf16, #tpu.memory_space<vmem>>, vector<1x128x128xbf16>
      %12 = vector.shape_cast %11 : vector<1x128x128xbf16> to vector<128x128xbf16>
      %cst = arith.constant dense<0.000000e+00> : vector<16x128xf32>
      %13 = tpu.matmul %10, %12, %cst {dimension_numbers = #tpu.dot_dimension_numbers<[1], [0], [0], [1], [0, 0, 1, 1], [], []>} : vector<16x128xbf16>, vector<128x128xbf16>, vector<16x128xf32> -> vector<16x128xf32>
      %c0_6 = arith.constant 0 : index
      %c0_7 = arith.constant 0 : index
      %c0_8 = arith.constant 0 : index
      %14 = vector.load %arg6[%c0_6, %c0_7, %c0_8] : memref<1x1x128xf32, #tpu.memory_space<vmem>>, vector<1x1x128xf32>
      %15 = vector.shape_cast %14 : vector<1x1x128xf32> to vector<1x128xf32>
      %16 = vector.broadcast %15 : vector<1x128xf32> to vector<16x128xf32>
      %17 = arith.addf %13, %16 : vector<16x128xf32>
      %cst_9 = arith.constant 0.000000e+00 : f32
      %18 = vector.broadcast %cst_9 : f32 to vector<16x128xf32>
      %19 = arith.maximumf %17, %18 : vector<16x128xf32>
      %20 = arith.truncf %19 : vector<16x128xf32> to vector<16x128xbf16>
      %c0_10 = arith.constant 0 : index
      %c0_11 = arith.constant 0 : index
      %c0_12 = arith.constant 0 : index
      %21 = vector.load %arg7[%c0_10, %c0_11, %c0_12] : memref<1x128x128xbf16, #tpu.memory_space<vmem>>, vector<1x128x128xbf16>
      %22 = vector.shape_cast %21 : vector<1x128x128xbf16> to vector<128x128xbf16>
      %cst_13 = arith.constant dense<0.000000e+00> : vector<16x128xf32>
      %23 = tpu.matmul %20, %22, %cst_13 {dimension_numbers = #tpu.dot_dimension_numbers<[1], [0], [0], [1], [0, 0, 1, 1], [], []>} : vector<16x128xbf16>, vector<128x128xbf16>, vector<16x128xf32> -> vector<16x128xf32>
      %c0_14 = arith.constant 0 : index
      %c0_15 = arith.constant 0 : index
      %c0_16 = arith.constant 0 : index
      %24 = vector.load %arg8[%c0_14, %c0_15, %c0_16] : memref<1x1x128xf32, #tpu.memory_space<vmem>>, vector<1x1x128xf32>
      %25 = vector.shape_cast %24 : vector<1x1x128xf32> to vector<1x128xf32>
      %26 = vector.broadcast %25 : vector<1x128xf32> to vector<16x128xf32>
      %27 = arith.addf %23, %26 : vector<16x128xf32>
      %c0_17 = arith.constant 0 : index
      %c0_18 = arith.constant 0 : index
      %c0_19 = arith.constant 0 : index
      %28 = vector.load %arg4[%c0_17, %c0_18, %c0_19] : memref<1x16x1xf32, #tpu.memory_space<vmem>>, vector<1x16x1xf32>
      %29 = vector.shape_cast %28 : vector<1x16x1xf32> to vector<16x1xf32>
      %30 = vector.broadcast %29 : vector<16x1xf32> to vector<16x128xf32>
      %31 = arith.mulf %27, %30 : vector<16x128xf32>
      %c0_20 = arith.constant 0 : index
      %c0_21 = arith.constant 0 : index
      %c0_22 = arith.constant 0 : index
      %32 = vector.load %arg9[%c0_20, %c0_21, %c0_22] : memref<1x16x128xf32, #tpu.memory_space<vmem>>, vector<1x16x128xf32>
      %33 = vector.shape_cast %32 : vector<1x16x128xf32> to vector<16x128xf32>
      %34 = vector.shape_cast %31 : vector<16x128xf32> to vector<1x16x128xf32>
      tpu.vector_store %arg9[%c0_20, %c0_21, %c0_22], %34 {strides = array<i32>} : memref<1x16x128xf32, #tpu.memory_space<vmem>>, vector<1x16x128xf32>,
    } else {
    }
    %true = arith.constant true
    %6 = arith.xori %3, %true : i1
    %7 = arith.extui %6 : i1 to i32
    %c0_i32_0 = arith.constant 0 : i32
    %8 = arith.cmpi ne, %7, %c0_i32_0 : i32
    scf.if %8 {
      %cst = arith.constant 0.000000e+00 : f32
      %9 = vector.broadcast %cst : f32 to vector<16x128xf32>
      %c0 = arith.constant 0 : index
      %c0_1 = arith.constant 0 : index
      %c0_2 = arith.constant 0 : index
      %10 = vector.load %arg9[%c0, %c0_1, %c0_2] : memref<1x16x128xf32, #tpu.memory_space<vmem>>, vector<1x16x128xf32>
      %11 = vector.shape_cast %10 : vector<1x16x128xf32> to vector<16x128xf32>
      %12 = vector.shape_cast %9 : vector<16x128xf32> to vector<1x16x128xf32>
      tpu.vector_store %arg9[%c0, %c0_1, %c0_2], %12 {strides = array<i32>} : memref<1x16x128xf32, #tpu.memory_space<vmem>>, vector<1x16x128xf32>,
    } else {
    }
    return
  }
  func.func @transform_0(%arg0: i32, %arg1: i32, %arg2: memref<8xi32, #tpu.memory_space<smem>>) -> (i32, i32, i32) {
    %c0_i32 = arith.constant 0 : i32
    %c0_i32_0 = arith.constant 0 : i32
    return %arg0, %arg1, %c0_i32 : i32, i32, i32
  }
  func.func @transform_1(%arg0: i32, %arg1: i32, %arg2: memref<8xi32, #tpu.memory_space<smem>>) -> (i32, i32, i32) {
    %c0_i32 = arith.constant 0 : i32
    %c0_i32_0 = arith.constant 0 : i32
    return %arg0, %arg1, %c0_i32 : i32, i32, i32
  }
  func.func @transform_2(%arg0: i32, %arg1: i32, %arg2: memref<8xi32, #tpu.memory_space<smem>>) -> (i32, i32, i32) {
    %c0_i32 = arith.constant 0 : i32
    %c0_i32_0 = arith.constant 0 : i32
    %c0_i32_1 = arith.constant 0 : i32
    return %arg0, %c0_i32, %c0_i32_0 : i32, i32, i32
  }
  func.func @transform_3(%arg0: i32, %arg1: i32, %arg2: memref<8xi32, #tpu.memory_space<smem>>) -> (i32, i32, i32) {
    %c0_i32 = arith.constant 0 : i32
    %c0_i32_0 = arith.constant 0 : i32
    %c0_i32_1 = arith.constant 0 : i32
    return %arg0, %c0_i32, %c0_i32_0 : i32, i32, i32
  }
  func.func @transform_4(%arg0: i32, %arg1: i32, %arg2: memref<8xi32, #tpu.memory_space<smem>>) -> (i32, i32, i32) {
    %c0_i32 = arith.constant 0 : i32
    %c0_i32_0 = arith.constant 0 : i32
    %c0_i32_1 = arith.constant 0 : i32
    return %arg0, %c0_i32, %c0_i32_0 : i32, i32, i32
  }
  func.func @transform_5(%arg0: i32, %arg1: i32, %arg2: memref<8xi32, #tpu.memory_space<smem>>) -> (i32, i32, i32) {
    %c0_i32 = arith.constant 0 : i32
    %c0_i32_0 = arith.constant 0 : i32
    %c0_i32_1 = arith.constant 0 : i32
    return %arg0, %c0_i32, %c0_i32_0 : i32, i32, i32
  }
  func.func @transform_6(%arg0: i32, %arg1: i32, %arg2: memref<8xi32, #tpu.memory_space<smem>>) -> (i32, i32, i32) {
    %c0_i32 = arith.constant 0 : i32
    %c0_i32_0 = arith.constant 0 : i32
    return %arg0, %arg1, %c0_i32 : i32, i32, i32
  }
}

</mosaic_0001>

<bundles_post_ra>
// kernel: sparse_moe_forward.2
= control target key start
LH: loop header
LB: loop body
LE: loop exit
PB: predicated region body
PF: predicated region fallthrough
CT: control target
= control target key end

     0   :  { %v191_v0 = vmov 0.0   ;;  %vm192_vm0 = vmmov 0   ;;  %s249_s1 = inlined_call_operand.vmem [shape: bf16[128,128], index: 1, kind: input, shape index: {}]   ;;  %s250_s0 = inlined_call_operand.vmem [shape: bf16[16,128], index: 0, kind: input, shape index: {}]   ;;  %s251_s2 = inlined_call_operand.vmem [shape: f32[1,128], index: 2, kind: input, shape index: {}]   ;;  %s252_s3 = inlined_call_operand.vmem [shape: f32[16,128], index: 3, kind: output, shape index: {}]  }
   0x1   :  { %160 = vmatprep.subr.bf16.mxu0 %v191_v0  ;;  %v182_v1 = vld [vmem:[%s249_s1] sm:$0xff]   ;;  %176 = vmatprep.mubr.msk.bf16.mxu0 %vm192_vm0, %v191_v0  ;;  %v183_v2 = vld [vmem:[%s249_s1 + $0x8] sm:$0xff]   ;;  %v184_v3 = vld [vmem:[%s249_s1 + $0x10] sm:$0xff]  }
   0x2   :  { %161 = vmatpush3.bf16.msra.mxu0 %v182_v1  ;;  %v185_v4 = vld [vmem:[%s249_s1 + $0x18] sm:$0xff]   ;;  %v186_v5 = vld [vmem:[%s249_s1 + $0x20] sm:$0xff]   ;;  %v187_v6 = vld [vmem:[%s249_s1 + $0x28] sm:$0xff]  }
   0x3   :  { %162 = vmatprep.subr.bf16.mxu0 %v191_v0  ;;  %v188_v7 = vld [vmem:[%s249_s1 + $0x30] sm:$0xff]   ;;  %v189_v8 = vld [vmem:[%s249_s1 + $0x38] sm:$0xff]   ;;  %v190_v9 = vld [vmem:[%s250_s0] sm:$0xff]  }
   0x4   :  { %v141_v10 = vld [vmem:[%s251_s2] ss:$0 sm:$0xff] }
   0x6   :  { %163 = vmatpush3.bf16.msra.mxu0 %v183_v2 }
   0x7   :  { %164 = vmatprep.subr.bf16.mxu0 %v191_v0 }
   0xa   :  { %165 = vmatpush3.bf16.msra.mxu0 %v184_v3 }
   0xb   :  { %166 = vmatprep.subr.bf16.mxu0 %v191_v0 }
   0xe   :  { %167 = vmatpush3.bf16.msra.mxu0 %v185_v4 }
   0xf   :  { %168 = vmatprep.subr.bf16.mxu0 %v191_v0 }
  0x12   :  { %169 = vmatpush3.bf16.msra.mxu0 %v186_v5 }
  0x13   :  { %170 = vmatprep.subr.bf16.mxu0 %v191_v0 }
  0x16   :  { %171 = vmatpush3.bf16.msra.mxu0 %v187_v6 }
  0x17   :  { %172 = vmatprep.subr.bf16.mxu0 %v191_v0 }
  0x1a   :  { %173 = vmatpush3.bf16.msra.mxu0 %v188_v7 }
  0x1b   :  { %174 = vmatprep.subr.bf16.mxu0 %v191_v0 }
  0x1e   :  { %175 = vmatpush3.bf16.msra.mxu0 %v189_v8 }
  0x21   :  { %177 = vmatmul.mubr.bf16.vlgmr.msra.gmra.mrb[0].mxu0 %v190_v9 }
  0xf4   :  { %v128_v11 = vpop.f32.mrb[0].mxu0 }
  0xf5   :  { %v129_v12 = vadd.f32 %v141_v10, %v128_v11  ;;  %v178_v13 = vpop.f32.mrb[1].mxu0 }
  0xf6   :  { %v131_v14 = vpop.f32.mrb[2].mxu0 }
  0xf7   :  { %135 = vst [vmem:[%s252_s3] sm:$0xff] %v129_v12  ;;  %v132_v15 = vadd.f32 %v141_v10, %v131_v14  ;;  %v179_v16 = vpop.f32.mrb[3].mxu0 }
  0xf9   :  { %136 = vst [vmem:[%s252_s3 + $0x8] sm:$0xff] %v132_v15 }

// kernel: sparse_moe_forward.3
= control target key start
LH: loop header
LB: loop body
LE: loop exit
PB: predicated region body
PF: predicated region fallthrough
CT: control target
= control target key end

     0   :  { %s1151_s0 = inlined_call_operand.vmem [shape: s32[8], index: 0, kind: input, shape index: {}]   ;;  %s1152_s1 = inlined_call_operand.vmem [shape: bf16[8,16,128], index: 1, kind: input, shape index: {}]   ;;  %s1153_s2 = inlined_call_operand.vmem [shape: f32[8,16,1], index: 2, kind: input, shape index: {}]   ;;  %s1154_s3 = inlined_call_operand.vmem [shape: bf16[8,128,128], index: 3, kind: input, shape index: {}]   ;;  %s1155_s4 = inlined_call_operand.vmem [shape: f32[8,1,128], index: 4, kind: input, shape index: {}]   ;;  %s1156_s5 = inlined_call_operand.vmem [shape: bf16[8,128,128], index: 5, kind: input, shape index: {}]   ;;  %s1157_s6 = inlined_call_operand.vmem [shape: f32[8,1,128], index: 6, kind: input, shape index: {}]   ;;  %s1158_s7 = inlined_call_operand.vmem [shape: f32[8,16,128], index: 7, kind: output, shape index: {}]  }
   0x1   :  { %s12_s26 = sshll.u32 %s1151_s0, 4  ;;  %s13_s26 = int_to_ptr.vmem [resolvable:$true] %s12_s26 }
   0x2   :  { %s963_s27 = scalar_lea.vmem %s13_s26, 16  ;;  %p968_p1 = scmp.lt.s32.totalorder %s13_s26, %s13_s26 }
   0x3   :  { %p964_p0 = scmp.ne.s32.totalorder %s13_s26, %s963_s27  ;;  %p969_p2 = scmp.lt.s32.totalorder %s963_s27, %s963_s27 }
   0x5   :  { %p970_p3 = por %p969_p2, %p968_p1 }
   0x7   :  { %p971_p4 = pnand %p970_p3, %p964_p0 }
   0x9   :  { %974 = shalt.err (!%p971_p4)  }
   0xa   :  { %s1001_s28 = smov [#allocation3]  }
   0xb   :  { %15 = dma.vmem_to_smem %s13_s26, 16, %s1001_s28, [#allocation2] }
   0xc   :  { %987 = dma.done.wait [#allocation2], 16 }
   0xd   :  { %988 = vsyncadd [#allocation2], 4294967280 }
   0xe   :  { %17 = sfence }
   0xf   :  { %s1049_s29 = smov 0   ;;  %s1051_s30 = smov 0  }
  0x10   :  { %s1053_s8 = smov 0  }
  0x11 LB: > { %s35_s0 = sadd.s32 1, %s995_s30  ;;  %p817_p5 = scmp.ge.s32.totalorder %s999_s8, 1  ;;  %s999_s8 = sphi %s1053_s8, %s23_s8   ;;  %s995_s30 = sphi %s1051_s30, %s1160_s30   ;;  %s991_s29 = sphi %s1049_s29, %s1159_s29  }
  0x12   : > { %p37_p6 = scmp.ge.s32.totalorder %s35_s0, 8  ;;  %p293_p7 = scmp.lt.s32.totalorder %s999_s8, 9 }
  0x14   : > { %s1162_s0 = smov (%p37_p6, %s35_s0), 0  ;;  %p294_p8 = pnand %p817_p5, %p293_p7 }
  0x15   : > { %p357_p9 = scmp.lt.s32.totalorder (!%p294_p8), %s991_s29, 7  ;;  %s1067_s9 = sld [smem:[#allocation3 + %s991_s29]] (!%p294_p8) }
  0x16   : > { %297 = sbr.rel (%p294_p8) target bundleno = 514 (0x202), region = 44 }
  0x1b   : > { %p829_p10 = scmp.le.s32.totalorder (!%p294_p8), %s1067_s9, 0 }
  0x1d   : > { %s1164_s29 = smov (!%p357_p9, %s991_s29), 7  ;;  %408 = sbr.rel (%p829_p10) target bundleno = 505 (0x1f9), region = 48 }
  0x1e   : > { %s853_s10 = sshll.u32 %s1164_s29, 3  ;;  %s854_s11 = sshll.u32 %s1164_s29, 4  ;;  %v1002_v1 = vmov (!%p829_p10), 0.0   ;;  %vm1003_vm0 = vmmov (!%p829_p10), 0   ;;  %v1004_v19 = vmov (!%p829_p10), 0  }
  0x1f   : > { %s1076_s14 = scalar_lea.vmem %s1152_s1, %s853_s10  ;;  %s1081_s17 = scalar_lea.vmem %s1153_s2, %s854_s11  ;;  %876 = vmatprep.subr.bf16.mxu0 (!%p829_p10), %v1002_v1  ;;  %896 = vmatprep.subr.bf16.mxu1 (!%p829_p10), %v1002_v1 }
  0x20   : > { %s855_s18 = sshll.u32 %s1164_s29, 6  ;;  %s383_s21 = scalar_lea.vmem %s1155_s4, %s1164_s29  ;;  %892 = vmatprep.mubr.msk.bf16.mxu0 (!%p829_p10), %vm1003_vm0, %v1002_v1  ;;  %912 = vmatprep.mubr.msk.bf16.mxu1 (!%p829_p10), %vm1003_vm0, %v1002_v1  ;;  %v954_v15 = vld [vmem:[%s1076_s14] sm:$0xff] (!%p829_p10)   ;;  %v645_v20 = vld [vmem:[%s1081_s17 + $0x8] sm:$0xff] (!%p829_p10) }
  0x21   : > { %s1091_s24 = scalar_lea.vmem %s1154_s3, %s855_s18  ;;  %s1096_s27 = scalar_lea.vmem %s1156_s5, %s855_s18  ;;  %v644_v18 = vld [vmem:[%s1081_s17] sm:$0xff] (!%p829_p10)  ;;  %945 = vset.pattern.permute.xlu0 (!%p829_p10), %v1004_v19 }
  0x22   : > { %s391_s12 = scalar_lea.vmem %s1157_s6, %s1164_s29  ;;  %s1105_s16 = scalar_lea.vmem %s1158_s7, %s854_s11  ;;  %v946_v0 = vld [vmem:[%s1091_s24] sm:$0xff] (!%p829_p10)   ;;  %v947_v2 = vld [vmem:[%s1091_s24 + $0x8] sm:$0xff] (!%p829_p10)   ;;  %v948_v3 = vld [vmem:[%s1091_s24 + $0x10] sm:$0xff] (!%p829_p10)   ;;  %648 = vperm.xlu0 (!%p829_p10), %945, %v644_v18  }
  0x23   : > { %877 = vmatpush3.bf16.msra.mxu0 (!%p829_p10), %v946_v0  ;;  %v955_v4 = vld [vmem:[%s1096_s27] sm:$0xff] (!%p829_p10)   ;;  %v949_v5 = vld [vmem:[%s1091_s24 + $0x18] sm:$0xff] (!%p829_p10)   ;;  %v956_v6 = vld [vmem:[%s1096_s27 + $0x8] sm:$0xff] (!%p829_p10)  }
  0x24   : > { %878 = vmatprep.subr.bf16.mxu0 %v1002_v1  ;;  %897 = vmatpush3.bf16.msra.mxu1 %v955_v4  ;;  %v950_v7 = vld [vmem:[%s1091_s24 + $0x20] sm:$0xff]   ;;  %v957_v8 = vld [vmem:[%s1096_s27 + $0x10] sm:$0xff]   ;;  %v951_v9 = vld [vmem:[%s1091_s24 + $0x28] sm:$0xff]  }
  0x25   : > { %898 = vmatprep.subr.bf16.mxu1 %v1002_v1  ;;  %v958_v10 = vld [vmem:[%s1096_s27 + $0x18] sm:$0xff]   ;;  %v952_v11 = vld [vmem:[%s1091_s24 + $0x30] sm:$0xff]   ;;  %v959_v12 = vld [vmem:[%s1096_s27 + $0x20] sm:$0xff]  }
  0x26   : > { %v953_v13 = vld [vmem:[%s1091_s24 + $0x38] sm:$0xff]   ;;  %v960_v14 = vld [vmem:[%s1096_s27 + $0x28] sm:$0xff]   ;;  %v961_v16 = vld [vmem:[%s1096_s27 + $0x30] sm:$0xff]   ;;  %653 = vperm.xlu0 %945, %v645_v20  }
  0x27   : > { %879 = vmatpush3.bf16.msra.mxu0 %v947_v2  ;;  %v962_v17 = vld [vmem:[%s1096_s27 + $0x38] sm:$0xff]   ;;  %v830_v21 = vld [vmem:[%s383_s21] ss:$0 sm:$0xff] }
  0x28   : > { %880 = vmatprep.subr.bf16.mxu0 %v1002_v1  ;;  %899 = vmatpush3.bf16.msra.mxu1 %v956_v6  ;;  %v840_v32 = vld [vmem:[%s391_s12] ss:$0 sm:$0xff] }
  0x29   : > { %900 = vmatprep.subr.bf16.mxu1 %v1002_v1 }
  0x2b   : > { %881 = vmatpush3.bf16.msra.mxu0 %v948_v3 }
  0x2c   : > { %882 = vmatprep.subr.bf16.mxu0 %v1002_v1  ;;  %901 = vmatpush3.bf16.msra.mxu1 %v957_v8 }
  0x2d   : > { %902 = vmatprep.subr.bf16.mxu1 %v1002_v1 }
  0x2f   : > { %883 = vmatpush3.bf16.msra.mxu0 %v949_v5 }
  0x30   : > { %884 = vmatprep.subr.bf16.mxu0 %v1002_v1  ;;  %903 = vmatpush3.bf16.msra.mxu1 %v958_v10 }
  0x31   : > { %904 = vmatprep.subr.bf16.mxu1 %v1002_v1 }
  0x33   : > { %885 = vmatpush3.bf16.msra.mxu0 %v950_v7 }
  0x34   : > { %886 = vmatprep.subr.bf16.mxu0 %v1002_v1  ;;  %905 = vmatpush3.bf16.msra.mxu1 %v959_v12 }
  0x35   : > { %906 = vmatprep.subr.bf16.mxu1 %v1002_v1 }
  0x37   : > { %887 = vmatpush3.bf16.msra.mxu0 %v951_v9 }
  0x38   : > { %888 = vmatprep.subr.bf16.mxu0 %v1002_v1  ;;  %907 = vmatpush3.bf16.msra.mxu1 %v960_v14 }
  0x39   : > { %908 = vmatprep.subr.bf16.mxu1 %v1002_v1 }
  0x3b   : > { %889 = vmatpush3.bf16.msra.mxu0 %v952_v11 }
  0x3c   : > { %890 = vmatprep.subr.bf16.mxu0 %v1002_v1  ;;  %909 = vmatpush3.bf16.msra.mxu1 %v961_v16 }
  0x3d   : > { %910 = vmatprep.subr.bf16.mxu1 %v1002_v1 }
  0x3f   : > { %891 = vmatpush3.bf16.msra.mxu0 %v953_v13 }
  0x40   : > { %911 = vmatpush3.bf16.msra.mxu1 %v962_v17 }
  0x42   : > { %893 = vmatmul.mubr.bf16.vlgmr.msra.gmra.mrb[0].mxu0 %v954_v15 }
  0xa1   : > { %v649_v31 = vpop.permute.xlu0 %648 }
  0xa5   : > { %v654_v40 = vpop.permute.xlu0 %653 }
 0x115   : > { %v522_v22 = vpop.f32.mrb[0].mxu0 }
 0x116   : > { %v523_v23 = vadd.f32 %v830_v21, %v522_v22  ;;  %v894_v24 = vpop.f32.mrb[1].mxu0 }
 0x117   : > { %v525_v25 = vpop.f32.mrb[2].mxu0 }
 0x118   : > { %v526_v26 = vadd.f32 %v830_v21, %v525_v25  ;;  %v895_v27 = vpop.f32.mrb[3].mxu0  ;;  %v529_v28 = vmax.f32 %v523_v23, 0.0 }
 0x11a   : > { %v530_v29 = vmax.f32 %v526_v26, 0.0 }
 0x11c   : > { %v531_v30 = vpack.c.bf16 %v530_v29, %v529_v28 }
 0x11e   : > { %913 = vmatmul.mubr.bf16.vlgmr.msra.gmra.mrb[0].mxu1 %v531_v30 }
 0x1f1   : > { %v637_v33 = vpop.f32.mrb[0].mxu1 }
 0x1f2   : > { %v638_v34 = vadd.f32 %v840_v32, %v637_v33  ;;  %v914_v35 = vpop.f32.mrb[1].mxu1 }
 0x1f3   : > { %v640_v36 = vpop.f32.mrb[2].mxu1 }
 0x1f4   : > { %v656_v37 = vmul.f32 %v649_v31, %v638_v34  ;;  %v641_v38 = vadd.f32 %v840_v32, %v640_v36  ;;  %v915_v39 = vpop.f32.mrb[3].mxu1 }
 0x1f6   : > { %658 = vst [vmem:[%s1105_s16] sm:$0xff] %v656_v37  ;;  %v657_v41 = vmul.f32 %v654_v40, %v641_v38 }
 0x1f8   : > { %659 = vst [vmem:[%s1105_s16 + $0x8] sm:$0xff] %v657_v41 }
 0x1f9 PF: > { %p850_p11 = scmp.gt.s32.totalorder %s1067_s9, 0 }
 0x1fa   : > { %v1005_v42 = vmov (!%p850_p11), 0.0  }
 0x1fb   : > { %663 = sbr.rel (%p850_p11) target bundleno = 514 (0x202), region = 52  ;;  %664 = vst [vmem:[%s1105_s16] sm:$0xff] (!%p850_p11), %v1005_v42  ;;  %665 = vst [vmem:[%s1105_s16 + $0x8] sm:$0xff] (!%p850_p11), %v1005_v42 }
 0x202 PF: > { %s23_s8 = sadd.s32 1, %s999_s8   ;;  %s1159_s29 = smov %s995_s30 }
 0x203   : > { %p20_p12 = scmp.ge.s32.totalorder %s23_s8, 10   ;;  %s1160_s30 = smov %s1162_s0 }
 0x205   :  { %22 = sbr.rel (!%p20_p12) target bundleno = 17 (0x11), region = 97 }

</bundles_post_ra>
